<compile_context>
chip_gen: v7x
topology: tpu7x:2x2x1
jax: 0.10.0
libtpu: 0.0.40
codegen_flags: <defaults>
</compile_context>

<pallas_src>
import numpy as np
import jax
import jax.numpy as jnp
from jax.experimental import pallas as pl
from jax.experimental.pallas import tpu as pltpu


# --------------------------------------------------------------------------
# Kernel 1: per-tile (pool @ im2col) @ W   (conv 3x3 + adaptive avg pool)
# --------------------------------------------------------------------------
def conv_pool_kernel(x_ref, pool_ref, w_ref, o_ref):
    """One grid step processes a tile of B images.

    x_ref:    (B, H*W, 9*Ci)      bf16 im2col slabs
    pool_ref: (P_pad, H*W)        bf16 adaptive-avg-pool matrix (zero pad rows)
    w_ref:    (9*Ci, Co_pad)      bf16 folded conv weights (zero pad lanes)
    o_ref:    (B, P_pad, Co_pad)  f32 pooled conv output (pre-BN)
    """
    b, hw, kdim = x_ref.shape
    p_pad = pool_ref.shape[0]

    # Reassociated order: pool the im2col columns first (tiny M = Ho*Wo),
    # then apply the conv weights.  All bf16 x bf16 with f32 accumulation.
    pool_b = jnp.broadcast_to(pool_ref[...], (b, p_pad, hw))
    pooled_cols = jnp.einsum(
        'bpw,bwk->bpk', pool_b, x_ref[...],
        preferred_element_type=jnp.float32)                     # (B, P_pad, 9Ci)

    pc = pooled_cols.astype(jnp.bfloat16).reshape(b * p_pad, kdim)
    out = jnp.dot(pc, w_ref[...], preferred_element_type=jnp.float32)
    # Conv bias intentionally omitted: training-mode BatchNorm (batch stats)
    # cancels any per-channel constant added before it.
    o_ref[...] = out.reshape(o_ref.shape)


# --------------------------------------------------------------------------
# Kernel 2: BatchNorm2d (training-mode batch stats) + LeakyReLU, fused affine
# --------------------------------------------------------------------------
def bn_lrelu_kernel(p_ref, gamma_ref, beta_ref, o_ref):
    """p_ref: (N*Ho*Wo, Co_pad) f32 pooled slab; o_ref same shape."""
    p = p_ref[...]
    inv_m = 1.0 / p.shape[0]
    mean = jnp.sum(p, axis=0, keepdims=True) * inv_m            # (1, C)
    d = p - mean
    var = jnp.sum(d * d, axis=0, keepdims=True) * inv_m         # biased variance
    scale = gamma_ref[...] * jax.lax.rsqrt(var + 1e-5)          # (1, C)
    shift = beta_ref[...] - mean * scale                        # (1, C)
    y = p * scale + shift                                       # fused BN affine
    o_ref[...] = jnp.maximum(y, 0.01 * y)                       # LeakyReLU(0.01)


def _adaptive_pool_matrix(n_in, n_out):
    """Row-stochastic matrix implementing PyTorch AdaptiveAvgPool1d semantics."""
    p = np.zeros((n_out, n_in), np.float32)
    for i in range(n_out):
        s = (i * n_in) // n_out
        e = -((-(i + 1) * n_in) // n_out)   # ceil((i+1)*n_in / n_out)
        p[i, s:e] = 1.0 / (e - s)
    return p


def _pick_batch_tile(n):
    """Images per grid step: amortize per-step overhead, keep grid >= 2 (v7x)."""
    if n <= 1:
        return 1
    return max(1, min(8, n // 2))


def cnn_module_forward(x_nchw, w_oihw, b, gamma, beta, ho, wo):
    n, ci, hi, wi = x_nchw.shape
    co = w_oihw.shape[0]
    co_pad = ((co + 127) // 128) * 128      # lane-dense channel dim (stay at 128)
    kdim = 9 * ci
    hw = hi * wi
    p = ho * wo
    p_pad = ((p + 7) // 8) * 8              # sublane-aligned pooled rows

    b_tile = _pick_batch_tile(n)
    n_pad = ((n + b_tile - 1) // b_tile) * b_tile
    grid_len = n_pad // b_tile

    # ---- layout glue (wrapper-side, pure XLA) ----
    # NCHW -> NHWC, zero pad spatial by 1 (conv padding=1), build im2col slab.
    # TODO(synk): for large H*W*Ci build im2col in-kernel from the padded NHWC
    # image to cut the 9x HBM read amplification; negligible at 16x16x4.
    x = jnp.transpose(x_nchw, (0, 2, 3, 1)).astype(jnp.float32)
    xpad = jnp.pad(x, ((0, 0), (1, 1), (1, 1), (0, 0)))
    cols = [xpad[:, kh:kh + hi, kw:kw + wi, :]
            for kh in range(3) for kw in range(3)]
    im2col = jnp.concatenate(cols, axis=-1).reshape(n, hw, kdim)
    im2col = jnp.pad(im2col, ((0, n_pad - n), (0, 0), (0, 0))).astype(jnp.bfloat16)

    # conv weights (Co, Ci, 3, 3) -> (9*Ci, Co) -> pad lanes -> bf16
    w2 = jnp.transpose(w_oihw, (2, 3, 1, 0)).reshape(kdim, co)
    w2 = jnp.pad(w2, ((0, 0), (0, co_pad - co))).astype(jnp.bfloat16)

    # Conv bias is mathematically absorbed by the batch-stat BatchNorm below.
    del b

    g2 = jnp.pad(jnp.reshape(gamma, (1, co)), ((0, 0), (0, co_pad - co))).astype(jnp.float32)
    be2 = jnp.pad(jnp.reshape(beta, (1, co)), ((0, 0), (0, co_pad - co))).astype(jnp.float32)

    # per-image pooling matrix kron(Ph, Pw), zero-padded rows to p_pad, bf16.
    pool = np.kron(_adaptive_pool_matrix(hi, ho), _adaptive_pool_matrix(wi, wo))
    pool = np.pad(pool, ((0, p_pad - p), (0, 0)))
    pool = jnp.asarray(pool, jnp.bfloat16)

    # ---- call 1: conv + pool over batch tiles ("parallel" buys 2x on v7x) ----
    pooled = pl.pallas_call(
        conv_pool_kernel,
        out_shape=jax.ShapeDtypeStruct((n_pad, p_pad, co_pad), jnp.float32),
        grid=(grid_len,),
        in_specs=[
            pl.BlockSpec((b_tile, hw, kdim), lambda i: (i, 0, 0)),
            pl.BlockSpec((p_pad, hw), lambda i: (0, 0)),
            pl.BlockSpec((kdim, co_pad), lambda i: (0, 0)),
        ],
        out_specs=pl.BlockSpec((b_tile, p_pad, co_pad), lambda i: (i, 0, 0)),
        compiler_params=pltpu.CompilerParams(
            dimension_semantics=("parallel",),
            vmem_limit_bytes=32 * 1024 * 1024),   # fits v5e/v6e/v7x scoped VMEM
    )(im2col, pool, w2)

    # Drop batch / pooled-row padding BEFORE BatchNorm so batch statistics are
    # computed over exactly the real N*Ho*Wo samples.
    pooled2d = pooled[:n, :p, :].reshape(n * p, co_pad)

    # ---- call 2: BatchNorm (batch stats) + LeakyReLU on the tiny pooled slab ----
    out2d = pl.pallas_call(
        bn_lrelu_kernel,
        out_shape=jax.ShapeDtypeStruct((n * p, co_pad), jnp.float32),
        in_specs=[pl.BlockSpec(memory_space=pltpu.MemorySpace.VMEM)] * 3,
        out_specs=pl.BlockSpec(memory_space=pltpu.MemorySpace.VMEM),
        compiler_params=pltpu.CompilerParams(vmem_limit_bytes=32 * 1024 * 1024),
    )(pooled2d, g2, be2)

    # back to NCHW, drop channel padding
    out = out2d.reshape(n, ho, wo, co_pad)[..., :co]
    return jnp.transpose(out, (0, 3, 1, 2))


def _reference(x, w, b, gamma, beta, ho, wo):
    """Pure-JAX f32 reference reproducing the PyTorch forward (training-mode BN)."""
    y = jax.lax.conv_general_dilated(
        x, w, window_strides=(1, 1), padding=((1, 1), (1, 1)),
        dimension_numbers=("NCHW", "OIHW", "NCHW"))
    y = y + b[None, :, None, None]
    _, _, h, wdim = y.shape
    rows = []
    for i in range(ho):
        hs, he = (i * h) // ho, -((-(i + 1) * h) // ho)
        cols = []
        for j in range(wo):
            ws, we = (j * wdim) // wo, -((-(j + 1) * wdim) // wo)
            cols.append(jnp.mean(y[:, :, hs:he, ws:we], axis=(2, 3)))
        rows.append(jnp.stack(cols, axis=-1))
    p = jnp.stack(rows, axis=-2)                                    # (N, Co, Ho, Wo)
    mean = jnp.mean(p, axis=(0, 2, 3), keepdims=True)
    var = jnp.mean((p - mean) ** 2, axis=(0, 2, 3), keepdims=True)
    pn = (p - mean) / jnp.sqrt(var + 1e-5)
    pb = pn * gamma[None, :, None, None] + beta[None, :, None, None]
    return jnp.where(pb >= 0, pb, 0.01 * pb)


if __name__ == "__main__":
    # Small shapes implied by the module: ci, co, hi, ho, wi, wo
    n, ci, co = 2, 4, 8
    hi, ho, wi, wo = 16, 6, 16, 5

    key = jax.random.PRNGKey(0)
    k1, k2, k3, k4, k5 = jax.random.split(key, 5)
    x = jax.random.normal(k1, (n, ci, hi, wi), jnp.float32)
    conv_w = 0.1 * jax.random.normal(k2, (co, ci, 3, 3), jnp.float32)
    conv_b = 0.1 * jax.random.normal(k3, (co,), jnp.float32)
    gamma = 1.0 + 0.1 * jax.random.normal(k4, (co,), jnp.float32)
    beta = 0.1 * jax.random.normal(k5, (co,), jnp.float32)

    out = cnn_module_forward(x, conv_w, conv_b, gamma, beta, ho, wo)
    out = jax.block_until_ready(out)

    assert out.shape == (n, co, ho, wo), out.shape
    ref = np.asarray(_reference(x, conv_w, conv_b, gamma, beta, ho, wo))
    # bf16 matmul operands with f32 accumulation: slightly loose tolerance.
    if not np.allclose(np.asarray(out), ref, atol=2e-2, rtol=2e-2):
        max_err = float(np.max(np.abs(np.asarray(out) - ref)))
        raise AssertionError(f"mismatch vs reference, max_err={max_err}")

    print("KERNEL_OK")
</pallas_src>

<mosaic_0001>
module attributes {stable_mosaic.version = 11 : i64} {
  func.func @conv_pool_kernel(%arg0: i32, %arg1: memref<1x256x36xbf16, #tpu.memory_space<vmem>>, %arg2: memref<32x256xbf16, #tpu.memory_space<vmem>>, %arg3: memref<36x128xbf16, #tpu.memory_space<vmem>>, %arg4: memref<1x32x128xf32, #tpu.memory_space<vmem>>) attributes {dimension_semantics = [#tpu.dimension_semantics<parallel>], iteration_bounds = array<i64: 2>, scalar_prefetch = 0 : i64, scratch_operands = 0 : i64, tpu.core_type = #tpu.core_type<tc>, window_params = [{transform_indices = @transform_0, window_bounds = array<i64: 1, 256, 36>}, {pipeline_mode = #tpu.pipeline_mode<synchronous>, transform_indices = @transform_1, window_bounds = array<i64: 32, 256>}, {pipeline_mode = #tpu.pipeline_mode<synchronous>, transform_indices = @transform_2, window_bounds = array<i64: 36, 128>}, {transform_indices = @transform_3, window_bounds = array<i64: 1, 32, 128>}]} {
    %c0 = arith.constant 0 : index
    %c0_0 = arith.constant 0 : index
    %0 = vector.load %arg2[%c0, %c0_0] : memref<32x256xbf16, #tpu.memory_space<vmem>>, vector<32x256xbf16>
    %1 = vector.shape_cast %0 : vector<32x256xbf16> to vector<1x32x256xbf16>
    %c0_1 = arith.constant 0 : index
    %c0_2 = arith.constant 0 : index
    %c0_3 = arith.constant 0 : index
    %2 = vector.load %arg1[%c0_1, %c0_2, %c0_3] : memref<1x256x36xbf16, #tpu.memory_space<vmem>>, vector<1x256x36xbf16>
    "tpu.trace_start"() <{level = 10 : i32, message = "bpw,bwk->bpk"}> : () -> ()
    %cst = arith.constant dense<0.000000e+00> : vector<1x32x36xf32>
    %3 = tpu.matmul %1, %2, %cst {dimension_numbers = #tpu.dot_dimension_numbers<[2], [1], [1], [2], [0, 0, 0, 1, 1, 2], [0], [0]>} : vector<1x32x256xbf16>, vector<1x256x36xbf16>, vector<1x32x36xf32> -> vector<1x32x36xf32>
    "tpu.trace_stop"() : () -> ()
    %4 = arith.truncf %3 : vector<1x32x36xf32> to vector<1x32x36xbf16>
    %5 = vector.shape_cast %4 : vector<1x32x36xbf16> to vector<32x36xbf16>
    %c0_4 = arith.constant 0 : index
    %c0_5 = arith.constant 0 : index
    %6 = vector.load %arg3[%c0_4, %c0_5] : memref<36x128xbf16, #tpu.memory_space<vmem>>, vector<36x128xbf16>
    %cst_6 = arith.constant dense<0.000000e+00> : vector<32x128xf32>
    %7 = tpu.matmul %5, %6, %cst_6 {dimension_numbers = #tpu.dot_dimension_numbers<[1], [0], [0], [1], [0, 0, 1, 1], [], []>} : vector<32x36xbf16>, vector<36x128xbf16>, vector<32x128xf32> -> vector<32x128xf32>
    %8 = vector.shape_cast %7 : vector<32x128xf32> to vector<1x32x128xf32>
    %c0_7 = arith.constant 0 : index
    %c0_8 = arith.constant 0 : index
    %c0_9 = arith.constant 0 : index
    %9 = vector.load %arg4[%c0_7, %c0_8, %c0_9] : memref<1x32x128xf32, #tpu.memory_space<vmem>>, vector<1x32x128xf32>
    tpu.vector_store %arg4[%c0_7, %c0_8, %c0_9], %8 {strides = array<i32>} : memref<1x32x128xf32, #tpu.memory_space<vmem>>, vector<1x32x128xf32>,
    return
  }
  func.func @transform_0(%arg0: i32) -> (i32, i32, i32) {
    %c0_i32 = arith.constant 0 : i32
    %c0_i32_0 = arith.constant 0 : i32
    %c0_i32_1 = arith.constant 0 : i32
    return %arg0, %c0_i32, %c0_i32_0 : i32, i32, i32
  }
  func.func @transform_1(%arg0: i32) -> (i32, i32) {
    %c0_i32 = arith.constant 0 : i32
    %c0_i32_0 = arith.constant 0 : i32
    %c0_i32_1 = arith.constant 0 : i32
    return %c0_i32, %c0_i32_0 : i32, i32
  }
  func.func @transform_2(%arg0: i32) -> (i32, i32) {
    %c0_i32 = arith.constant 0 : i32
    %c0_i32_0 = arith.constant 0 : i32
    %c0_i32_1 = arith.constant 0 : i32
    return %c0_i32, %c0_i32_0 : i32, i32
  }
  func.func @transform_3(%arg0: i32) -> (i32, i32, i32) {
    %c0_i32 = arith.constant 0 : i32
    %c0_i32_0 = arith.constant 0 : i32
    %c0_i32_1 = arith.constant 0 : i32
    return %arg0, %c0_i32, %c0_i32_0 : i32, i32, i32
  }
}

</mosaic_0001>

<bundles_post_ra>
// kernel: tpu_custom_call.1
= control target key start
LH: loop header
LB: loop body
LE: loop exit
PB: predicated region body
PF: predicated region fallthrough
CT: control target
= control target key end

     0   :  { %8 = vsyncpa [#allocation3], 0  ;;  %s893_s0 = inlined_call_operand.vmem [shape: bf16[2,256,36], index: 0, kind: input, shape index: {}]   ;;  %s894_s1 = inlined_call_operand.vmem [shape: bf16[32,256], index: 1, kind: input, shape index: {}]   ;;  %s895_s2 = inlined_call_operand.vmem [shape: bf16[36,128], index: 2, kind: input, shape index: {}]   ;;  %s896_s3 = inlined_call_operand.hbm [shape: f32[2,32,128], index: 3, kind: output, shape index: {}]  }
   0x1   :  { %10 = vsyncpa [#allocation3 + $0x1], 0  ;;  %s769_s12 = smov 0   ;;  %s771_s13 = smov 0  }
   0x2   :  { %s773_s14 = smov 0   ;;  %s775_s15 = smov 0  }
   0x3 LB: > { %s790_s16 = sadd.s32 4294967295, %s744_s15   ;;  %s533_s17 = sadd.s32 4294967294, %s744_s15   ;;  %s744_s15 = sphi %s775_s15, %s902_s15   ;;  %s740_s14 = sphi %s773_s14, %s901_s14   ;;  %s736_s13 = sphi %s771_s13, %s900_s13   ;;  %s732_s12 = sphi %s769_s12, %s899_s12  }
   0x4   : > { %s794_s18 = sadd.s32 1, %s744_s15   ;;  %s91_s19 = sadd.s32 1, %s740_s14 }
   0x5   : > { %s88_s20 = ssub.s32 %s744_s15, %s794_s18  ;;  %p101_p0 = scmp.ne.s32.totalorder %s740_s14, %s736_s13 }
   0x6   : > { %p89_p1 = scmp.eq.s32.totalorder %s88_s20, 0  ;;  %p102_p2 = scmp.eq.s32.totalorder %s790_s16, 1 }
   0x7   : > { %p107_p3 = scmp.ne.s32.totalorder %s736_s13, %s732_s12  ;;  %p108_p4 = scmp.eq.s32.totalorder %s533_s17, 1 }
   0x8   : > { %s805_s21 = scalar_select %p89_p1, %s740_s14, %s91_s19  }
   0x9   : > { %p807_p5 = por %p102_p2, %p101_p0  ;;  %p811_p6 = por %p108_p4, %p107_p3 }
   0xa   : > { %p536_p7 = scmp.ge.s32.totalorder %s744_s15, 1  ;;  %p140_p8 = scmp.lt.s32.totalorder %s744_s15, 3 }
   0xc   : > { %p141_p9 = pnand %p536_p7, %p140_p8 }
   0xd   : > { %p164_p10 = scmp.lt.s32.totalorder (!%p141_p9), %s790_s16, 1  ;;  %v675_v0 = vld [vmem:[%s894_s1 + $0x4] ss:$8 sps:$4 sm:$0xff] (!%p141_p9)   ;;  %v673_v17 = vld [vmem:[%s894_s1] ss:$8 sps:$4 sm:$0xff] (!%p141_p9)   ;;  %vm400_vm0 = vcmask (!%p141_p9), 1041408  }
   0xe   : > { %144 = sbr.rel (%p141_p9) target bundleno = 515 (0x203), region = 32  ;;  %354 = vmatprep.mubr.bf16.mxu0 (!%p141_p9), %v675_v0  ;;  %v676_v18 = vld [vmem:[%s894_s1 + $0x14] ss:$8 sps:$4 sm:$0xff] (!%p141_p9)   ;;  %v678_v19 = vld [vmem:[%s894_s1 + $0x10] ss:$8 sps:$4 sm:$0xff] (!%p141_p9)   ;;  %v679_v20 = vld [vmem:[%s895_s2] sm:$0xff] (!%p141_p9)  }
   0xf   : > { %605 = vmatprep.subr.bf16.mxu1 (!%p141_p9), %v679_v20  ;;  %v680_v21 = vld [vmem:[%s895_s2 + $0x8] sm:$0xff] (!%p141_p9)   ;;  %v681_v22 = vld [vmem:[%s895_s2 + $0x10] ss:$0 sps:$4 sm:$0x33] (!%p141_p9)   ;;  %vm393_vm1 = vcmask (!%p141_p9), 293888   ;;  %s161_s25 = sand.u32 (!%p141_p9), 1, %s736_s13  }
  0x10   : > { %606 = vmatpush3.bf16.msra.mxu1 (!%p141_p9), %v679_v20  ;;  %v402_v23 = vsel (!%p141_p9), %vm400_vm0, %v681_v22, 0  ;;  %s571_s29 = sshll.u32 (!%p141_p9), %s790_s16, 9  ;;  %s852_s6 = scalar_lea.sflag (!%p141_p9), [#allocation3], %s161_s25 }
  0x11   : > { %607 = vmatprep.subr.bf16.mxu1 (!%p141_p9), %v680_v21  ;;  %s850_s5 = scalar_lea.hbm (!%p141_p9), %s896_s3, %s571_s29  ;;  %s746_s7 = smov (!%p141_p9), [#allocation2]  }
  0x12   : > { %s686_s8 = sshll.u32 (!%p141_p9), %s746_s7, 4  ;;  %s687_s8 = int_to_ptr.vmem [resolvable:$false] %s686_s8 }
  0x13   : > { %s688_s9 = scalar_lea.vmem (!%p141_p9), %s687_s8, 1024 }
  0x14   : > { %608 = vmatpush3.bf16.msra.mxu1 (!%p141_p9), %v680_v21 }
  0x15   : > { %s165_s26 = scalar_select %p164_p10, %s790_s16, 1  ;;  %615 = vmatprep.subr.msk.bf16.mxu1 %vm400_vm0, %v681_v22 }
  0x17   : > { %s570_s27 = sshll.u32 %s165_s26, 7  ;;  %s537_s26 = sshll.u32 %s161_s25, 5 }
  0x18   : > { %s168_s30 = scalar_lea.vmem %s893_s0, %s570_s27  ;;  %610 = vmatpush3.bf16.msra.mxu1 %v402_v23  ;;  %s163_s27 = scalar_lea.vmem [#allocation2], %s537_s26 }
  0x19   : > { %v657_v1 = vld [vmem:[%s168_s30 + $0x40] sm:$0xff]   ;;  %v659_v3 = vld [vmem:[%s168_s30 + $0x48] sm:$0xff]   ;;  %v661_v5 = vld [vmem:[%s168_s30 + $0x50] sm:$0xff]   ;;  %s471_s28 = sshll.u32 %s163_s27, 4  ;;  %s845_s28 = int_to_ptr.vmem [resolvable:$true] %s471_s28 }
  0x1a   : > { %v658_v2 = vld [vmem:[%s168_s30] sm:$0xff]   ;;  %572 = vmatprep.subr.bf16.mxu0 %v657_v1  ;;  %v660_v4 = vld [vmem:[%s168_s30 + $0x8] sm:$0xff]   ;;  %v662_v6 = vld [vmem:[%s168_s30 + $0x10] sm:$0xff]   ;;  %s682_s16 = scalar_lea.vmem %s845_s28, 512  ;;  %p689_p0 = scmp.lt.s32.totalorder %s845_s28, %s687_s8 }
  0x1b   : > { %573 = vmatpush3.bf16.msra.mxu0 %v658_v2  ;;  %v663_v7 = vld [vmem:[%s168_s30 + $0x58] sm:$0xff]   ;;  %v665_v9 = vld [vmem:[%s168_s30 + $0x60] sm:$0xff]   ;;  %v667_v11 = vld [vmem:[%s168_s30 + $0x68] sm:$0xff]   ;;  %p683_p11 = scmp.ne.s32.totalorder %s845_s28, %s682_s16  ;;  %p690_p1 = scmp.lt.s32.totalorder %s688_s9, %s682_s16 }
  0x1c   : > { %574 = vmatprep.subr.bf16.mxu0 %v659_v3  ;;  %v664_v8 = vld [vmem:[%s168_s30 + $0x18] sm:$0xff]   ;;  %v666_v10 = vld [vmem:[%s168_s30 + $0x20] sm:$0xff]   ;;  %v668_v12 = vld [vmem:[%s168_s30 + $0x28] sm:$0xff]  }
  0x1d   : > { %v669_v13 = vld [vmem:[%s168_s30 + $0x70] sm:$0xff]   ;;  %v671_v15 = vld [vmem:[%s168_s30 + $0x78] sm:$0xff]   ;;  %p684_p12 = pnand %p683_p11, %p807_p5  ;;  %p691_p2 = por %p690_p1, %p689_p0 }
  0x1e   : > { %v670_v14 = vld [vmem:[%s168_s30 + $0x30] sm:$0xff]   ;;  %v672_v16 = vld [vmem:[%s168_s30 + $0x38] sm:$0xff]  }
  0x1f   : > { %575 = vmatpush3.bf16.msra.mxu0 %v660_v4  ;;  %p685_p13 = pneg %p684_p12 }
  0x20   : > { %576 = vmatprep.subr.bf16.mxu0 %v661_v5 }
  0x21   : > { %p692_p3 = pnand %p691_p2, %p685_p13 }
  0x23   : > { %577 = vmatpush3.bf16.msra.mxu0 %v662_v6 }
  0x24   : > { %578 = vmatprep.subr.bf16.mxu0 %v663_v7 }
  0x27   : > { %579 = vmatpush3.bf16.msra.mxu0 %v664_v8 }
  0x28   : > { %580 = vmatprep.subr.bf16.mxu0 %v665_v9 }
  0x2b   : > { %581 = vmatpush3.bf16.msra.mxu0 %v666_v10 }
  0x2c   : > { %582 = vmatprep.subr.bf16.mxu0 %v667_v11 }
  0x2f   : > { %583 = vmatpush3.bf16.msra.mxu0 %v668_v12 }
  0x30   : > { %584 = vmatprep.subr.bf16.mxu0 %v669_v13 }
  0x33   : > { %585 = vmatpush3.bf16.msra.mxu0 %v670_v14 }
  0x34   : > { %586 = vmatprep.subr.bf16.mxu0 %v671_v15 }
  0x37   : > { %587 = vmatpush3.bf16.msra.mxu0 %v672_v16 }
  0x3a   : > { %355 = vmatmul.mubr.bf16.vlgmr.msra.gmra.mrb[0].mxu0 %v673_v17 }
  0x3b   : > { %362 = vmatprep.mubr.bf16.mxu0 %v676_v18 }
  0x42   : > { %363 = vmatmul.mubr.bf16.gmra.mrb[4].mxu0 %v678_v19 }
 0x10d   : > { %v588_v24 = vpop.f32.mrb[0].mxu0 }
 0x10e   : > { %v589_v25 = vpop.f32.mrb[1].mxu0 }
 0x10f   : > { %v590_v26 = vadd.f32 %v589_v25, %v588_v24  ;;  %v591_v27 = vpop.f32.mrb[2].mxu0 }
 0x110   : > { %v592_v28 = vpop.f32.mrb[3].mxu0 }
 0x111   : > { %v593_v29 = vadd.f32 %v592_v28, %v591_v27 }
 0x113   : > { %v371_v30 = vpack.c.bf16 %v593_v29, %v590_v26 }
 0x115   : > { %v594_v31 = vpop.f32.mrb[4].mxu0  ;;  %611 = vmatprep.mubr.msk.bf16.mxu1 %vm393_vm1, %v371_v30 }
 0x116   : > { %v595_v32 = vpop.f32.mrb[5].mxu0 }
 0x117   : > { %v596_v33 = vadd.f32 %v595_v32, %v594_v31  ;;  %v597_v34 = vpop.f32.mrb[6].mxu0 }
 0x118   : > { %v598_v35 = vpop.f32.mrb[7].mxu0 }
 0x119   : > { %v599_v36 = vadd.f32 %v598_v35, %v597_v34 }
 0x11b   : > { %v372_v37 = vpack.c.bf16 %v599_v36, %v596_v33 }
 0x11d   : > { %612 = vmatmul.mubr.msk.bf16.vlgmr.msra.gmra.mrb[0].mxu1 %vm393_vm1, %v372_v37 }
 0x1f0   : > { %v613_v38 = vpop.f32.mrb[0].mxu1 }
 0x1f1   : > { %455 = vst [vmem:[%s163_s27 + $0x10] sm:$0xff] %v613_v38  ;;  %v438_v39 = vpop.f32.mrb[1].mxu1 }
 0x1f2   : > { %453 = vst [vmem:[%s163_s27] sm:$0xff] %v438_v39  ;;  %v614_v40 = vpop.f32.mrb[2].mxu1 }
 0x1f3   : > { %456 = vst [vmem:[%s163_s27 + $0x18] sm:$0xff] %v614_v40  ;;  %v441_v41 = vpop.f32.mrb[3].mxu1 }
 0x1f4   : > { %454 = vst [vmem:[%s163_s27 + $0x8] sm:$0xff] %v441_v41 }
 0x1f5   : > { %695 = shalt.err (!%p692_p3)
}
 0x1f6   : > { %s696_s10 = scalar_lea.hbm %s850_s5, 512  ;;  %s700_s19 = scalar_lea.hbm %s896_s3, 1024 }
 0x1f7   : > { %p697_p4 = scmp.ne.s32.totalorder %s850_s5, %s696_s10  ;;  %p701_p9 = scmp.lt.u32.totalorder %s850_s5, %s896_s3 }
 0x1f8   : > { %p702_p10 = scmp.lt.u32.totalorder %s700_s19, %s696_s10  ;;  %p704_p12 = scmp.lt.u32.totalorder %s696_s10, %s850_s5 }
 0x1f9   : > { %p698_p7 = pnand %p697_p4, %p807_p5 }
 0x1fa   : > { %p703_p11 = por %p702_p10, %p701_p9 }
 0x1fb   : > { %p699_p8 = pneg %p698_p7 }
 0x1fc   : > { %p705_p13 = por %p704_p12, %p703_p11 }
 0x1fe   : > { %p706_p0 = pnand %p705_p13, %p699_p8 }
 0x200   : > { %709 = shalt.err (!%p706_p0)
}
 0x201   : > { %s747_s25 = smov 128   ;;  %s748_s26 = smov 8  }
 0x202   : > { %616 = dma.vmem_to_hbm [thread:$0]  (%p807_p5), %s845_s28, 512, %s850_s5, %s852_s6, %s747_s25, %s747_s25, %s748_s26  }
 0x203 PF: > { %p622_p1 = scmp.ge.s32.totalorder %s744_s15, 2  ;;  %s486_s27 = sand.u32 1, %s732_s12  }
 0x204   : > { %s487_s29 = scalar_lea.sflag [#allocation3], %s486_s27 }
 0x205   : > { %p619_p2 = pnand %p622_p1, %p811_p6 }
 0x207   : > { %727 = dma.done.wait (!%p619_p2), %s487_s29, 512  }
 0x208   : > { %729 = vsyncadd (!%p619_p2), %s487_s29, 4294966784  ;;  %p13_p3 = scmp.ge.s32.totalorder %s794_s18, 4   ;;  %s899_s12 = smov %s736_s13 }
 0x209   : > { %s900_s13 = smov %s740_s14  ;;  %s901_s14 = smov %s805_s21 }
 0x20a   : > { %s902_s15 = smov %s794_s18  ;;  %15 = sbr.rel (!%p13_p3) target bundleno = 3 (0x3), region = 67 }
 0x211   :  { %492 = vsyncpa [#allocation3], 1 }
 0x212   :  { %494 = vsyncpa [#allocation3 + $0x1], 1 }

</bundles_post_ra>
